<compile_context>
chip_gen: v7x
topology: tpu7x:2x2x1
jax: 0.10.0
libtpu: 0.0.40
codegen_flags: <defaults>
</compile_context>

<pallas_src>
import math

import jax
import jax.numpy as jnp
from jax.experimental import pallas as pl
from jax.experimental.pallas import tpu as pltpu


_INV_SQRT2 = 1.0 / math.sqrt(2.0)


def _gelu_exact(x):
    # x * 0.5 * (1 + erf(x / sqrt(2)))  -- matches the PyTorch reference gelu.
    return x * 0.5 * (1.0 + jax.lax.erf(x * _INV_SQRT2))


def _round_up(x, m):
    return ((x + m - 1) // m) * m


def _bert_intermediate_kernel(x_ref, w_ref, b_ref, o_ref):
    # x_ref: (tm, H)   w_ref: (H, tn)   b_ref: (1, tn)   o_ref: (tm, tn)
    acc = jnp.dot(x_ref[...], w_ref[...], preferred_element_type=jnp.float32)
    acc = acc + b_ref[...].astype(jnp.float32)
    o_ref[...] = _gelu_exact(acc).astype(o_ref.dtype)


def bert_intermediate(hidden_states, weight, bias, *, tm=512, tn=256):
    """hidden_states: [B, S, H], weight: [H, I] (= torch W^T), bias: [I] -> [B, S, I]."""
    B, S, H = hidden_states.shape
    Hw, I = weight.shape
    assert Hw == H, "weight must be stored as [hidden, intermediate]"
    M = B * S

    dtype = hidden_states.dtype
    itemsize = jnp.dtype(dtype).itemsize
    # Second-to-last block dim must respect sublane packing (8 for f32, 16 for bf16).
    sub = 16 if itemsize == 2 else 8

    tm_eff = min(tm, _round_up(M, sub))
    tn_eff = min(tn, _round_up(I, 128))
    m_pad = _round_up(M, tm_eff)
    i_pad = _round_up(I, tn_eff)

    x2d = hidden_states.reshape(M, H)
    if m_pad != M:
        x2d = jnp.pad(x2d, ((0, m_pad - M), (0, 0)))
    w2d = weight
    b2d = bias.reshape(1, I)
    if i_pad != I:
        w2d = jnp.pad(w2d, ((0, 0), (0, i_pad - I)))
        b2d = jnp.pad(b2d, ((0, 0), (0, i_pad - I)))

    num_m = m_pad // tm_eff
    num_n = i_pad // tn_eff

    # Per-step tile footprint; the pipeline double-buffers each operand.
    tile_bytes = (tm_eff * H + H * tn_eff + tn_eff + tm_eff * tn_eff) * itemsize
    vmem_limit = int(min(max(4 * tile_bytes + (4 << 20), 32 << 20), 100 << 20))

    cost = pl.CostEstimate(
        flops=2 * m_pad * H * i_pad,
        transcendentals=m_pad * i_pad,
        # x once + weight re-streamed per M-tile + output once.
        bytes_accessed=itemsize * (m_pad * H + num_m * H * i_pad + m_pad * i_pad),
    )

    out2d = pl.pallas_call(
        _bert_intermediate_kernel,
        out_shape=jax.ShapeDtypeStruct((m_pad, i_pad), dtype),
        grid_spec=pltpu.PrefetchScalarGridSpec(
            num_scalar_prefetch=0,
            # N axis innermost: the x row-slab block index is constant across it,
            # so x is DMA'd once per M-tile and only W/bias are re-streamed.
            grid=(num_m, num_n),
            in_specs=[
                pl.BlockSpec((tm_eff, H), lambda i, j: (i, 0)),
                pl.BlockSpec((H, tn_eff), lambda i, j: (0, j)),
                pl.BlockSpec((1, tn_eff), lambda i, j: (0, j)),
            ],
            out_specs=pl.BlockSpec((tm_eff, tn_eff), lambda i, j: (i, j)),
        ),
        compiler_params=pltpu.CompilerParams(
            dimension_semantics=("parallel", "parallel"),
            vmem_limit_bytes=vmem_limit,
        ),
        cost_estimate=cost,
    )(x2d, w2d, b2d)

    return out2d[:M, :I].reshape(B, S, I)


def _reference(hidden_states, weight, bias):
    B, S, H = hidden_states.shape
    I = weight.shape[1]
    x = hidden_states.reshape(B * S, H).astype(jnp.float32)
    y = x @ weight.astype(jnp.float32) + bias.astype(jnp.float32)
    return _gelu_exact(y).reshape(B, S, I)


if __name__ == "__main__":
    key = jax.random.PRNGKey(0)

    # --- Test 1: small aligned BERT-like config, f32 (exact PyTorch semantics) ---
    B, S, H, I = 2, 8, 128, 512
    kx, kw, kb = jax.random.split(key, 3)
    hidden_states = jax.random.normal(kx, (B, S, H), dtype=jnp.float32)
    weight = jax.random.normal(kw, (H, I), dtype=jnp.float32) * 0.02
    bias = jax.random.normal(kb, (I,), dtype=jnp.float32) * 0.02

    out = bert_intermediate(hidden_states, weight, bias)
    jax.block_until_ready(out)
    ref = _reference(hidden_states, weight, bias)
    assert out.shape == (B, S, I)
    assert jnp.allclose(out, ref, atol=1e-5, rtol=1e-5), "f32 mismatch vs reference"

    # --- Test 2: non-tile-aligned shapes (padding path), f32 ---
    B2, S2, H2, I2 = 2, 5, 128, 320  # M=10 (not multiple of 8), I not multiple of tn
    k1, k2, k3 = jax.random.split(jax.random.PRNGKey(1), 3)
    hs2 = jax.random.normal(k1, (B2, S2, H2), dtype=jnp.float32)
    w2 = jax.random.normal(k2, (H2, I2), dtype=jnp.float32) * 0.02
    b2 = jax.random.normal(k3, (I2,), dtype=jnp.float32) * 0.02
    out2 = bert_intermediate(hs2, w2, b2)
    jax.block_until_ready(out2)
    ref2 = _reference(hs2, w2, b2)
    assert out2.shape == (B2, S2, I2)
    assert jnp.allclose(out2, ref2, atol=1e-5, rtol=1e-5), "padded-shape mismatch"

    # --- Test 3: bf16 activations/weights (halved HBM traffic, f32 accumulation) ---
    out_bf16 = bert_intermediate(
        hidden_states.astype(jnp.bfloat16),
        weight.astype(jnp.bfloat16),
        bias.astype(jnp.bfloat16),
    )
    jax.block_until_ready(out_bf16)
    assert out_bf16.dtype == jnp.bfloat16
    assert jnp.allclose(out_bf16.astype(jnp.float32), ref, atol=3e-2, rtol=3e-2), \
        "bf16 mismatch vs reference"

    print("KERNEL_OK")
</pallas_src>

<mosaic_0001>
module attributes {stable_mosaic.version = 11 : i64} {
  func.func @_bert_intermediate_kernel(%arg0: i32, %arg1: i32, %arg2: memref<16x128xf32, #tpu.memory_space<vmem>>, %arg3: memref<128x256xf32, #tpu.memory_space<vmem>>, %arg4: memref<1x256xf32, #tpu.memory_space<vmem>>, %arg5: memref<16x256xf32, #tpu.memory_space<vmem>>) attributes {dimension_semantics = [#tpu.dimension_semantics<parallel>, #tpu.dimension_semantics<parallel>], iteration_bounds = array<i64: 1, 2>, scalar_prefetch = 0 : i64, scratch_operands = 0 : i64, tpu.core_type = #tpu.core_type<tc>, window_params = [{transform_indices = @transform_0, window_bounds = array<i64: 16, 128>}, {transform_indices = @transform_1, window_bounds = array<i64: 128, 256>}, {transform_indices = @transform_2, window_bounds = array<i64: 1, 256>}, {transform_indices = @transform_3, window_bounds = array<i64: 16, 256>}]} {
    %c0 = arith.constant 0 : index
    %c0_0 = arith.constant 0 : index
    %0 = vector.load %arg2[%c0, %c0_0] : memref<16x128xf32, #tpu.memory_space<vmem>>, vector<16x128xf32>
    %c0_1 = arith.constant 0 : index
    %c0_2 = arith.constant 0 : index
    %1 = vector.load %arg3[%c0_1, %c0_2] : memref<128x256xf32, #tpu.memory_space<vmem>>, vector<128x256xf32>
    %cst = arith.constant dense<0.000000e+00> : vector<16x256xf32>
    %2 = tpu.matmul %0, %1, %cst {dimension_numbers = #tpu.dot_dimension_numbers<[1], [0], [0], [1], [0, 0, 1, 1], [], []>} : vector<16x128xf32>, vector<128x256xf32>, vector<16x256xf32> -> vector<16x256xf32>
    %c0_3 = arith.constant 0 : index
    %c0_4 = arith.constant 0 : index
    %3 = vector.load %arg4[%c0_3, %c0_4] : memref<1x256xf32, #tpu.memory_space<vmem>>, vector<1x256xf32>
    %4 = vector.broadcast %3 : vector<1x256xf32> to vector<16x256xf32>
    %5 = arith.addf %2, %4 : vector<16x256xf32>
    %cst_5 = arith.constant 5.000000e-01 : f32
    %6 = vector.broadcast %cst_5 : f32 to vector<16x256xf32>
    %7 = arith.mulf %5, %6 : vector<16x256xf32>
    %cst_6 = arith.constant 0.707106769 : f32
    %8 = vector.broadcast %cst_6 : f32 to vector<16x256xf32>
    %9 = arith.mulf %5, %8 : vector<16x256xf32>
    %10 = math.erf %9 : vector<16x256xf32>
    %cst_7 = arith.constant 1.000000e+00 : f32
    %11 = vector.broadcast %cst_7 : f32 to vector<16x256xf32>
    %12 = arith.addf %11, %10 : vector<16x256xf32>
    %13 = arith.mulf %7, %12 : vector<16x256xf32>
    %c0_8 = arith.constant 0 : index
    %c0_9 = arith.constant 0 : index
    %14 = vector.load %arg5[%c0_8, %c0_9] : memref<16x256xf32, #tpu.memory_space<vmem>>, vector<16x256xf32>
    tpu.vector_store %arg5[%c0_8, %c0_9], %13 {strides = array<i32>} : memref<16x256xf32, #tpu.memory_space<vmem>>, vector<16x256xf32>,
    return
  }
  func.func @transform_0(%arg0: i32, %arg1: i32) -> (i32, i32) {
    %c0_i32 = arith.constant 0 : i32
    %c0_i32_0 = arith.constant 0 : i32
    return %arg0, %c0_i32 : i32, i32
  }
  func.func @transform_1(%arg0: i32, %arg1: i32) -> (i32, i32) {
    %c0_i32 = arith.constant 0 : i32
    %c0_i32_0 = arith.constant 0 : i32
    return %c0_i32, %arg1 : i32, i32
  }
  func.func @transform_2(%arg0: i32, %arg1: i32) -> (i32, i32) {
    %c0_i32 = arith.constant 0 : i32
    %c0_i32_0 = arith.constant 0 : i32
    return %c0_i32, %arg1 : i32, i32
  }
  func.func @transform_3(%arg0: i32, %arg1: i32) -> (i32, i32) {
    %c0_i32 = arith.constant 0 : i32
    return %arg0, %arg1 : i32, i32
  }
}

</mosaic_0001>

<bundles_post_ra>
// kernel: tpu_custom_call.1
= control target key start
LH: loop header
LB: loop body
LE: loop exit
PB: predicated region body
PF: predicated region fallthrough
CT: control target
= control target key end

     0   :  { %8 = vsyncpa [#allocation3], 0  ;;  %s1115_s0 = inlined_call_operand.hbm [shape: f32[16,128], index: 0, kind: input, shape index: {}]   ;;  %s1116_s1 = inlined_call_operand.hbm [shape: f32[128,512], index: 1, kind: input, shape index: {}]   ;;  %s1117_s2 = inlined_call_operand.vmem [shape: f32[1,512], index: 2, kind: input, shape index: {}]   ;;  %s1118_s3 = inlined_call_operand.hbm [shape: f32[16,512], index: 3, kind: output, shape index: {}]  }
   0x1   :  { %9 = vsyncpa [#allocation6], 0 }
   0x2   :  { %11 = vsyncpa [#allocation6 + $0x1], 0 }
   0x3   :  { %12 = vsyncpa [#allocation4], 0 }
   0x4   :  { %14 = vsyncpa [#allocation4 + $0x1], 0  ;;  %s856_s12 = smov 0   ;;  %s858_s13 = smov 0  }
   0x5   :  { %s860_s14 = smov 0   ;;  %s862_s15 = smov 0  }
   0x6   :  { %s864_s16 = smov 0   ;;  %s866_s17 = smov 0  }
   0x7 LB: > { %s520_s18 = sadd.s32 4294967295, %s822_s17   ;;  %s521_s19 = sadd.s32 4294967294, %s822_s17   ;;  %s822_s17 = sphi %s866_s17, %s20_s17   ;;  %s818_s16 = sphi %s864_s16, %s1144_s16   ;;  %s814_s15 = sphi %s862_s15, %s1143_s15   ;;  %s810_s14 = sphi %s860_s14, %s1142_s14   ;;  %s806_s13 = sphi %s858_s13, %s1141_s13   ;;  %s802_s12 = sphi %s856_s12, %s1140_s12  }
   0x8   : > { %p72_p0 = scmp.ne.s32.totalorder %s810_s14, %s806_s13  ;;  %p73_p1 = scmp.eq.s32.totalorder %s822_s17, 0 }
   0x9   : > { %p78_p2 = scmp.ne.s32.totalorder %s806_s13, %s802_s12  ;;  %p893_p3 = scmp.eq.s32.totalorder %s520_s18, 0 }
   0xa   : > { %p897_p4 = por %p73_p1, %p72_p0  ;;  %p130_p5 = scmp.eq.s32.totalorder %s520_s18, 1 }
   0xb   : > { %s1125_s20 = scalar_select %p893_p3, 1, 0 }
   0xc   : > { %p903_p6 = por %p893_p3, %p78_p2  ;;  %p136_p7 = scmp.eq.s32.totalorder %s521_s19, 1 }
   0xd   : > { %p907_p8 = por %p130_p5, %p72_p0  ;;  %p522_p9 = scmp.ge.s32.totalorder %s822_s17, 1 }
   0xe   : > { %s1127_s22 = scalar_select %p903_p6, 1, 0 }
   0xf   : > { %s1128_s23 = scalar_select %p907_p8, 1, 0 }
  0x10   : > { %p912_p10 = por %p136_p7, %p78_p2  ;;  %p143_p11 = scmp.lt.s32.totalorder %s822_s17, 3 }
  0x11   : > { %s824_s26 = smov [#allocation2]   ;;  %p609_p1 = scmp.lt.s32.totalorder %s822_s17, 2 }
  0x12   : > { %s1129_s24 = scalar_select %p912_p10, 1, 0 }
  0x13   : > { %p917_p12 = pnand %p522_p9, %p143_p11  ;;  %s158_s27 = sshll.u32 %s824_s26, 4  ;;  %s921_s27 = int_to_ptr.vmem [resolvable:$true] %s158_s27 }
  0x14   : > { %p935_p2 = pnand %p609_p1, %p897_p4  ;;  %s29_s30 = sadd.s32 1, %s818_s16 }
  0x15   : > { %s1130_s25 = scalar_select %p917_p12, 1, 0 }
  0x16   : > { %p596_p13 = pneg %p917_p12  ;;  %s678_s6 = scalar_lea.hbm %s1115_s0, 256 }
  0x17   : > { %s1132_s29 = scalar_select %p935_p2, 1, 0 }
  0x18   : > { %p929_p5 = pnand %p596_p13, %p893_p3  ;;  %p679_p7 = scmp.ne.s32.totalorder %s1115_s0, %s678_s6 }
  0x19   : > { %p685_p4 = scmp.lt.u32.totalorder %s678_s6, %s1115_s0 }
  0x1a   : > { %p680_p9 = pneg %p929_p5 }
  0x1c   : > { %p681_p11 = pnand %p680_p9, %p679_p7 }
  0x1e   : > { %p682_p13 = pneg %p681_p11 }
  0x20   : > { %p687_p1 = pnand %p685_p4, %p682_p13 }
  0x22   : > { %690 = shalt.err (!%p687_p1)
}
  0x23   : > { %s691_s11 = scalar_lea.vmem %s921_s27, 256  ;;  %p699_p6 = scmp.lt.s32.totalorder %s921_s27, %s921_s27 }
  0x24   : > { %p692_p0 = scmp.ne.s32.totalorder %s921_s27, %s691_s11  ;;  %p700_p3 = scmp.lt.s32.totalorder %s691_s11, %s691_s11 }
  0x26   : > { %p694_p10 = pnand %p692_p0, %p680_p9  ;;  %p701_p12 = por %p700_p3, %p699_p6 }
  0x28   : > { %p695_p8 = pneg %p694_p10 }
  0x2a   : > { %p702_p2 = pnand %p701_p12, %p695_p8 }
  0x2c   : > { %705 = shalt.err (!%p702_p2)
}
  0x2d   : > { %s825_s18 = smov 128   ;;  %s826_s19 = smov 8  }
  0x2e   : > { %599 = dma.hbm_to_vmem [thread:$0]  (!%p929_p5), %s1115_s0, 256, %s921_s27, [#allocation3], %s825_s18, %s825_s18, %s826_s19  }
  0x2f   : > { %p30_p10 = scmp.ge.s32.totalorder %s29_s30, 2  ;;  %s65_s4 = sadd.s32 1, %s810_s14 }
  0x30   : > { %s172_s5 = sand.u32 1, %s810_s14   ;;  %s538_s8 = sshll.u32 %s818_s16, 8 }
  0x31   : > { %s1146_s30 = smov (%p30_p10, %s29_s30), 0  ;;  %s525_s6 = sshll.u32 %s172_s5, 8 }
  0x32   : > { %s62_s7 = ssub.s32 %s818_s16, %s1146_s30  ;;  %s971_s28 = scalar_lea.hbm %s1116_s1, %s538_s8 }
  0x33   : > { %p63_p3 = scmp.eq.s32.totalorder %s62_s7, 0  ;;  %s176_s27 = scalar_lea.vmem [#allocation5], %s525_s6 }
  0x34   : > { %s183_s11 = sshll.u32 %s176_s27, 4  ;;  %s978_s19 = scalar_lea.sflag [#allocation6], %s172_s5  ;;  %s976_s11 = int_to_ptr.vmem [resolvable:$true] %s183_s11 }
  0x35   : > { %s974_s18 = scalar_select %p63_p3, %s810_s14, %s65_s4  }
  0x36   : > { %s706_s21 = scalar_lea.hbm %s971_s28, 4096  ;;  %p1133_p8 = scmp.ne.s32.totalorder %s1132_s29, 0 }
  0x37   : > { %p707_p6 = scmp.ne.s32.totalorder %s971_s28, %s706_s21  ;;  %s711_s8 = scalar_lea.hbm %s1116_s1, 8192 }
  0x38   : > { %p708_p12 = pneg %p1133_p8  ;;  %p712_p2 = scmp.lt.u32.totalorder %s971_s28, %s1116_s1 }
  0x39   : > { %p713_p7 = scmp.lt.u32.totalorder %s711_s8, %s706_s21  ;;  %p715_p11 = scmp.lt.u32.totalorder %s706_s21, %s971_s28 }
  0x3a   : > { %p709_p0 = pnand %p708_p12, %p707_p6 }
  0x3b   : > { %p714_p9 = por %p713_p7, %p712_p2 }
  0x3c   : > { %p710_p5 = pneg %p709_p0 }
  0x3d   : > { %p716_p13 = por %p715_p11, %p714_p9 }
  0x3f   : > { %p717_p4 = pnand %p716_p13, %p710_p5 }
  0x41   : > { %720 = shalt.err (!%p717_p4)
}
  0x42   : > { %s721_s4 = scalar_lea.vmem %s976_s11, 4096  ;;  %s827_s5 = smov [#allocation5]  }
  0x43   : > { %p722_p1 = scmp.ne.s32.totalorder %s976_s11, %s721_s4  ;;  %s726_s10 = sshll.u32 %s827_s5, 4  ;;  %s727_s10 = int_to_ptr.vmem [resolvable:$false] %s726_s10 }
  0x44   : > { %s728_s27 = scalar_lea.vmem %s727_s10, 8192  ;;  %p729_p6 = scmp.lt.s32.totalorder %s976_s11, %s727_s10 }
  0x45   : > { %p724_p10 = pnand %p722_p1, %p708_p12  ;;  %p730_p0 = scmp.lt.s32.totalorder %s728_s27, %s721_s4 }
  0x47   : > { %p725_p3 = pneg %p724_p10  ;;  %p731_p2 = por %p730_p0, %p729_p6 }
  0x49   : > { %p732_p7 = pnand %p731_p2, %p725_p3 }
  0x4b   : > { %735 = shalt.err (!%p732_p7)
}
  0x4c   : > { %s828_s21 = smov 512   ;;  %s829_s26 = smov 256  }
  0x4d   : > { %s830_s7 = smov 16   ;;  %p1134_p12 = scmp.ne.s32.totalorder %s1130_s25, 0 }
  0x4e   : > { %603 = dma.hbm_to_vmem [thread:$0]  (!%p1133_p8), %s971_s28, 4096, %s976_s11, %s978_s19, %s828_s21, %s829_s26, %s830_s7  }
  0x4f   : > { %203 = sbr.rel (%p1134_p12) target bundleno = 376 (0x178), region = 32  ;;  %p1135_p5 = scmp.ne.s32.totalorder (!%p1134_p12), %s1125_s20, 0 }
  0x56   : > { %789 = dma.done.wait (%p1135_p5), [#allocation3], 256  }
  0x57   : > { %791 = vsyncadd (%p1135_p5), [#allocation3], 4294967040  ;;  %s1013_s8 = sand.u32 1, %s806_s13   ;;  %p1136_p8 = scmp.ne.s32.totalorder %s1127_s22, 0 }
  0x58   : > { %s530_s6 = sshll.u32 %s1013_s8, 8  ;;  %s210_s9 = scalar_lea.sflag [#allocation6], %s1013_s8 }
  0x59   : > { %s1017_s4 = scalar_lea.vmem [#allocation5], %s530_s6 }
  0x5a   : > { %793 = dma.done.wait (%p1136_p8), %s210_s9, 4096  }
  0x5b   : > { %795 = vsyncadd (%p1136_p8), %s210_s9, 4294963200  ;;  %v831_v0 = vmov 0.0   ;;  %v252_v1 = vld [vmem:[%s1017_s4 + $0x8] sm:$0xff]  ;;  %v254_v2 = vld [vmem:[%s1017_s4 + $0x18] sm:$0xff]  ;;  %s532_s20 = sshll.u32 %s814_s15, 1  ;;  %v285_v51 = vlaneseq  ;;  %s531_s28 = sshll.u32 %s1013_s8, 5 }
  0x5c   : > { %359 = vmatprep.mubr.f32.mxu0 %v831_v0  ;;  %365 = vmatprep.mubr.f32.mxu1 %v831_v0  ;;  %v251_v3 = vld [vmem:[%s1017_s4] sm:$0xff]  ;;  %v540_v4 = vpack.c.bf16 %v254_v2, %v252_v1  ;;  %v253_v5 = vld [vmem:[%s1017_s4 + $0x10] sm:$0xff]  ;;  %v256_v6 = vld [vmem:[%s1017_s4 + $0x28] sm:$0xff]  ;;  %p243_p9 = scmp.lt.s32.totalorder %s532_s20, 3  ;;  %s239_s11 = scalar_lea.vmem [#allocation7], %s531_s28 }
  0x5d   : > { %v258_v7 = vld [vmem:[%s1017_s4 + $0x38] sm:$0xff]  ;;  %v542_v8 = vpack.c.bf16 %v253_v5, %v251_v3  ;;  %v255_v10 = vld [vmem:[%s1017_s4 + $0x20] sm:$0xff]  ;;  %v257_v11 = vld [vmem:[%s1017_s4 + $0x30] sm:$0xff]  ;;  %v286_v52 = vshrl.u32 %v285_v51, 7  ;;  %s413_s19 = sshll.u32 %s239_s11, 4  ;;  %s539_s5 = sshll.u32 %s814_s15, 8  ;;  %s1061_s19 = int_to_ptr.vmem [resolvable:$true] %s413_s19 }
  0x5e   : > { %v544_v9 = vpack.c.bf16 %v258_v7, %v256_v6  ;;  %v260_v12 = vld [vmem:[%s1017_s4 + $0x48] sm:$0xff]  ;;  %541 = vmatprep.subr.bf16.mxu0 %v540_v4  ;;  %572 = vmatprep.subr.bf16.mxu1 %v540_v4  ;;  %v262_v13 = vld [vmem:[%s1017_s4 + $0x58] sm:$0xff]  ;;  %v546_v14 = vpack.c.bf16 %v257_v11, %v255_v10  ;;  %v259_v16 = vld [vmem:[%s1017_s4 + $0x40] sm:$0xff]  ;;  %s1148_s20 = smov (!%p243_p9, %s532_s20), 3  ;;  %s1066_s15 = scalar_lea.hbm %s1118_s3, %s539_s5 }
  0x5f   : > { %543 = vmatpush1.bf16.msra.mxu0 %v542_v8  ;;  %580 = vmatpush1.bf16.msra.mxu1 %v542_v8  ;;  %v548_v15 = vpack.c.bf16 %v262_v13, %v260_v12  ;;  %v261_v17 = vld [vmem:[%s1017_s4 + $0x50] sm:$0xff]  ;;  %v264_v18 = vld [vmem:[%s1017_s4 + $0x68] sm:$0xff]  ;;  %v266_v19 = vld [vmem:[%s1017_s4 + $0x78] sm:$0xff]  ;;  %s245_s29 = scalar_lea.vmem %s1117_s2, %s1148_s20  ;;  %v287_v53 = vsub.s32 0, %v286_v52  ;;  %v291_v55 = vsub.s32 1, %v286_v52  ;;  %s397_s21 = scalar_lea.sflag [#allocation4], %s1013_s8 }
  0x60   : > { %545 = vmatprep.subr.bf16.mxu0 %v544_v9  ;;  %573 = vmatprep.subr.bf16.mxu1 %v544_v9  ;;  %v550_v20 = vpack.c.bf16 %v261_v17, %v259_v16  ;;  %v552_v21 = vpack.c.bf16 %v266_v19, %v264_v18  ;;  %v263_v22 = vld [vmem:[%s1017_s4 + $0x60] sm:$0xff]  ;;  %v265_v23 = vld [vmem:[%s1017_s4 + $0x70] sm:$0xff]  ;;  %v268_v24 = vld [vmem:[%s1017_s4 + $0x88] sm:$0xff]  ;;  %s736_s26 = scalar_lea.vmem %s1061_s19, 512  ;;  %p1137_p13 = scmp.ne.s32.totalorder %s1128_s23, 0 }
  0x61   : > { %v270_v25 = vld [vmem:[%s1017_s4 + $0x98] sm:$0xff]  ;;  %v554_v26 = vpack.c.bf16 %v265_v23, %v263_v22  ;;  %v267_v28 = vld [vmem:[%s1017_s4 + $0x80] sm:$0xff]  ;;  %v269_v29 = vld [vmem:[%s1017_s4 + $0x90] sm:$0xff]  ;;  %p737_p11 = scmp.ne.s32.totalorder %s1061_s19, %s736_s26  ;;  %s832_s7 = smov [#allocation7]  }
  0x62   : > { %v556_v27 = vpack.c.bf16 %v270_v25, %v268_v24  ;;  %v272_v30 = vld [vmem:[%s1017_s4 + $0xa8] sm:$0xff]  ;;  %v274_v31 = vld [vmem:[%s1017_s4 + $0xb8] sm:$0xff]  ;;  %v558_v32 = vpack.c.bf16 %v269_v29, %v267_v28  ;;  %v271_v34 = vld [vmem:[%s1017_s4 + $0xa0] sm:$0xff]  ;;  %s740_s6 = sshll.u32 %s832_s7, 4  ;;  %s741_s6 = int_to_ptr.vmem [resolvable:$false] %s740_s6 }
  0x63   : > { %547 = vmatpush1.bf16.msra.mxu0 %v546_v14  ;;  %581 = vmatpush1.bf16.msra.mxu1 %v546_v14  ;;  %v560_v33 = vpack.c.bf16 %v274_v31, %v272_v30  ;;  %v273_v35 = vld [vmem:[%s1017_s4 + $0xb0] sm:$0xff]  ;;  %v276_v36 = vld [vmem:[%s1017_s4 + $0xc8] sm:$0xff]  ;;  %v278_v37 = vld [vmem:[%s1017_s4 + $0xd8] sm:$0xff]  ;;  %p738_p4 = pnand %p737_p11, %p1137_p13  ;;  %s742_s9 = scalar_lea.vmem %s741_s6, 1024 }
  0x64   : > { %549 = vmatprep.subr.bf16.mxu0 %v548_v15  ;;  %574 = vmatprep.subr.bf16.mxu1 %v548_v15  ;;  %v562_v38 = vpack.c.bf16 %v273_v35, %v271_v34  ;;  %v564_v39 = vpack.c.bf16 %v278_v37, %v276_v36  ;;  %v275_v40 = vld [vmem:[%s1017_s4 + $0xc0] sm:$0xff]  ;;  %v277_v41 = vld [vmem:[%s1017_s4 + $0xd0] sm:$0xff]  ;;  %v280_v42 = vld [vmem:[%s1017_s4 + $0xe8] sm:$0xff]  ;;  %p743_p10 = scmp.lt.s32.totalorder %s1061_s19, %s741_s6  ;;  %p744_p3 = scmp.lt.s32.totalorder %s742_s9, %s736_s26 }
  0x65   : > { %v282_v43 = vld [vmem:[%s1017_s4 + $0xf8] sm:$0xff]  ;;  %v566_v44 = vpack.c.bf16 %v277_v41, %v275_v40  ;;  %v279_v46 = vld [vmem:[%s1017_s4 + $0xe0] sm:$0xff]  ;;  %v281_v47 = vld [vmem:[%s1017_s4 + $0xf0] sm:$0xff]  ;;  %p739_p1 = pneg %p738_p4 }
  0x66   : > { %v568_v45 = vpack.c.bf16 %v282_v43, %v280_v42  ;;  %v570_v48 = vpack.c.bf16 %v281_v47, %v279_v46  ;;  %v249_v49 = vld [vmem:[#allocation2] sm:$0xff]  ;;  %v250_v50 = vld [vmem:[#allocation2 + $0x8] sm:$0xff]  ;;  %p745_p6 = por %p744_p3, %p743_p10 }
  0x67   : > { %551 = vmatpush1.bf16.msra.mxu0 %v550_v20  ;;  %582 = vmatpush1.bf16.msra.mxu1 %v550_v20  ;;  %v283_v54 = vld [vmem:[%s245_s29] sm:$0x3] }
  0x68   : > { %553 = vmatprep.subr.bf16.mxu0 %v552_v21  ;;  %575 = vmatprep.subr.bf16.mxu1 %v552_v21  ;;  %v288_v56 = vrot.slane %v283_v54, %v287_v53  ;;  %v292_v57 = vrot.slane %v283_v54, %v291_v55  ;;  %p746_p0 = pnand %p745_p6, %p739_p1 }
  0x6b   : > { %555 = vmatpush1.bf16.msra.mxu0 %v554_v26  ;;  %583 = vmatpush1.bf16.msra.mxu1 %v554_v26 }
  0x6c   : > { %557 = vmatprep.subr.bf16.mxu0 %v556_v27  ;;  %576 = vmatprep.subr.bf16.mxu1 %v556_v27 }
  0x6f   : > { %559 = vmatpush1.bf16.msra.mxu0 %v558_v32  ;;  %584 = vmatpush1.bf16.msra.mxu1 %v558_v32 }
  0x70   : > { %561 = vmatprep.subr.bf16.mxu0 %v560_v33  ;;  %577 = vmatprep.subr.bf16.mxu1 %v560_v33 }
  0x73   : > { %563 = vmatpush1.bf16.msra.mxu0 %v562_v38  ;;  %585 = vmatpush1.bf16.msra.mxu1 %v562_v38 }
  0x74   : > { %565 = vmatprep.subr.bf16.mxu0 %v564_v39  ;;  %578 = vmatprep.subr.bf16.mxu1 %v564_v39 }
  0x77   : > { %567 = vmatpush1.bf16.msra.mxu0 %v566_v44  ;;  %586 = vmatpush1.bf16.msra.mxu1 %v566_v44 }
  0x78   : > { %569 = vmatprep.subr.bf16.mxu0 %v568_v45  ;;  %579 = vmatprep.subr.bf16.mxu1 %v568_v45 }
  0x7b   : > { %571 = vmatpush1.bf16.msra.mxu0 %v570_v48  ;;  %587 = vmatpush1.bf16.msra.mxu1 %v570_v48 }
  0x7e   : > { %360 = vmatmul.mubr.f32.vlgmr.msra.gmra.mrb[0].mxu0 %v249_v49  ;;  %366 = vmatmul.mubr.f32.vlgmr.msra.gmra.mrb[0].mxu1 %v250_v50 }
 0x151   : > { %v361_v58 = vpop.f32.mrb[0].mxu0  ;;  %v367_v59 = vpop.f32.mrb[0].mxu1 }
 0x152   : > { %v362_v60 = vadd.f32 %v361_v58, %v288_v56  ;;  %v368_v61 = vadd.f32 %v367_v59, %v288_v56  ;;  %v363_v62 = vpop.f32.mrb[1].mxu0  ;;  %v369_v63 = vpop.f32.mrb[1].mxu1 }
 0x153   : > { %v364_v0 = vadd.f32 %v363_v62, %v292_v57  ;;  %v370_v1 = vadd.f32 %v369_v63, %v292_v57 }
 0x154   : > { %v376_v2 = vmul.f32 0.70710677, %v362_v60  ;;  %v378_v3 = vmul.f32 0.70710677, %v368_v61  ;;  %v372_v8 = vmul.f32 0.5, %v362_v60  ;;  %v374_v11 = vmul.f32 0.5, %v368_v61 }
 0x155   : > { %v377_v4 = vmul.f32 0.70710677, %v364_v0  ;;  %v379_v5 = vmul.f32 0.70710677, %v370_v1  ;;  %v373_v15 = vmul.f32 0.5, %v364_v0  ;;  %v375_v18 = vmul.f32 0.5, %v370_v1 }
 0x156   : > { %670 = verf.f32 %v376_v2 }
 0x157   : > { %672 = verf.f32 %v378_v3 }
 0x158   : > { %674 = verf.f32 %v377_v4 }
 0x159   : > { %676 = verf.f32 %v379_v5 }
 0x160   : > { %v671_v6 = vpop.eup %670 }
 0x161   : > { %v673_v7 = vpop.eup %672  ;;  %v384_v9 = vadd.f32 1.0, %v671_v6 }
 0x162   : > { %v675_v10 = vpop.eup %674  ;;  %v386_v12 = vadd.f32 1.0, %v673_v7 }
 0x163   : > { %v677_v13 = vpop.eup %676  ;;  %v388_v14 = vmul.f32 %v384_v9, %v372_v8  ;;  %v385_v16 = vadd.f32 1.0, %v675_v10 }
 0x164   : > { %v390_v17 = vmul.f32 %v386_v12, %v374_v11  ;;  %v387_v19 = vadd.f32 1.0, %v677_v13 }
 0x165   : > { %392 = vst [vmem:[%s239_s11] sm:$0xff] %v388_v14  ;;  %v389_v20 = vmul.f32 %v385_v16, %v373_v15 }
 0x166   : > { %394 = vst [vmem:[%s239_s11 + $0x10] sm:$0xff] %v390_v17  ;;  %v391_v21 = vmul.f32 %v387_v19, %v375_v18 }
 0x167   : > { %393 = vst [vmem:[%s239_s11 + $0x8] sm:$0xff] %v389_v20 }
 0x168   : > { %395 = vst [vmem:[%s239_s11 + $0x18] sm:$0xff] %v391_v21 }
 0x169   : > { %749 = shalt.err (!%p746_p0)
}
 0x16a   : > { %s750_s4 = scalar_lea.hbm %s1066_s15, 512  ;;  %s754_s25 = scalar_lea.hbm %s1118_s3, 1024 }
 0x16b   : > { %p751_p2 = scmp.ne.s32.totalorder %s1066_s15, %s750_s4  ;;  %p755_p5 = scmp.lt.u32.totalorder %s1066_s15, %s1118_s3 }
 0x16c   : > { %p756_p8 = scmp.lt.u32.totalorder %s754_s25, %s750_s4  ;;  %p758_p11 = scmp.lt.u32.totalorder %s750_s4, %s1066_s15 }
 0x16d   : > { %p752_p7 = pnand %p751_p2, %p1137_p13 }
 0x16e   : > { %p757_p9 = por %p756_p8, %p755_p5 }
 0x16f   : > { %p753_p12 = pneg %p752_p7 }
 0x170   : > { %p759_p4 = por %p758_p11, %p757_p9 }
 0x172   : > { %p760_p1 = pnand %p759_p4, %p753_p12 }
 0x174   : > { %763 = shalt.err (!%p760_p1)
}
 0x175   : > { %s833_s11 = smov 256   ;;  %s834_s5 = smov 512  }
 0x176   : > { %s835_s10 = smov 16  }
 0x177   : > { %594 = dma.vmem_to_hbm [thread:$0]  (%p1137_p13), %s1061_s19, 512, %s1066_s15, %s397_s21, %s833_s11, %s834_s5, %s835_s10  }
 0x178 PF: > { %s428_s27 = sand.u32 1, %s802_s12   ;;  %p1138_p10 = scmp.ne.s32.totalorder %s1129_s24, 0 }
 0x179   : > { %p1139_p3 = scmp.ge.s32.totalorder %s822_s17, 2  ;;  %s429_s26 = scalar_lea.sflag [#allocation4], %s428_s27 }
 0x17b   : > { %p605_p6 = pnand %p1139_p3, %p1138_p10 }
 0x17d   : > { %797 = dma.done.wait (!%p605_p6), %s429_s26, 512  }
 0x17e   : > { %799 = vsyncadd (!%p605_p6), %s429_s26, 4294966784  ;;  %s20_s17 = sadd.s32 1, %s822_s17   ;;  %s1140_s12 = smov %s806_s13 }
 0x17f   : > { %p17_p0 = scmp.ge.s32.totalorder %s20_s17, 4   ;;  %s1141_s13 = smov %s810_s14 }
 0x180   : > { %s1142_s14 = smov %s974_s18  ;;  %s1143_s15 = smov %s818_s16 }
 0x181   : > { %s1144_s16 = smov %s1146_s30  ;;  %19 = sbr.rel (!%p17_p0) target bundleno = 7 (0x7), region = 86 }
 0x188   :  { %434 = vsyncpa [#allocation3], 1 }
 0x189   :  { %436 = vsyncpa [#allocation3 + $0x1], 1 }
 0x18a   :  { %437 = vsyncpa [#allocation6], 1 }
 0x18b   :  { %439 = vsyncpa [#allocation6 + $0x1], 1 }
 0x18c   :  { %440 = vsyncpa [#allocation4], 1 }
 0x18d   :  { %442 = vsyncpa [#allocation4 + $0x1], 1 }

</bundles_post_ra>
